<compile_context>
chip_gen: v6e
topology: v6e:2x2x1
jax: 0.10.0
libtpu: 0.0.40
codegen_flags: <defaults>
</compile_context>

<pallas_src>
import functools
import math

import jax
import jax.numpy as jnp
from jax import lax
from jax.experimental import pallas as pl
from jax.experimental.pallas import tpu as pltpu


def _round_up(v, m):
    return (v + m - 1) // m * m


def _exact_gelu(z):
    # PyTorch F.gelu default = exact (erf-based) gelu; erf runs on the EUP slot.
    return 0.5 * z * (1.0 + lax.erf(z * jnp.float32(1.0 / math.sqrt(2.0))))


def _matcher_kernel(x_ref, y_ref, w1_ref, s_ref, b_ref, u_ref, o_ref, *, H, K):
    KH = K * H
    x = x_ref[...]                                   # (TB, H)  bf16
    y = y_ref[...]                                   # (TB, H)  bf16

    # ---- matmul 1 (fused): [x | y] @ [[Wl, 0, Vx], [0, T, Vy]] ----
    xy = jnp.concatenate([x, y], axis=-1)            # (TB, 2H) bf16, lane concat
    full = jnp.dot(xy, w1_ref[...],
                   preferred_element_type=jnp.float32)  # (TB, 2*KH + K) f32

    a       = full[:, :KH]                           # A[b, k*H+j] = sum_i x_i W[k,i,j]
    y_tiled = full[:, KH:2 * KH]                     # y_tiled[b, k*H+j] = y[b,j]
    lin     = full[:, 2 * KH:]                       # (TB, K): x@Vx + y@Vy

    # ---- matmul 2: bilinear reduce over j via block-selector (tiny, N=K) ----
    ay = (a * y_tiled).astype(jnp.bfloat16)          # (TB, KH) bf16
    z = jnp.dot(ay, s_ref[...],
                preferred_element_type=jnp.float32)  # (TB, K) f32
    z = z + lin + b_ref[...]                         # bilinear bias (1, K) broadcast

    h = _exact_gelu(z)                               # (TB, K) f32

    # ---- final U projection: VPU multiply + lane reduce (no N=1 MXU matmul) ----
    o_ref[...] = jnp.sum(h * u_ref[...], axis=-1,
                         keepdims=True).astype(o_ref.dtype)


def matcher_forward(x, y, W_bil, b_bil, V_w, U_w, *, block_b=512):
    """x, y: (B, n_hid). W_bil: (K, H, H), b_bil: (K,), V_w: (K, 2H), U_w: (1, K)."""
    B, H = x.shape
    K = W_bil.shape[0]
    KH = K * H

    # ---- parameter plumbing (plain JAX, outside the kernel) ----
    Wl = jnp.transpose(W_bil, (1, 0, 2)).reshape(H, KH)        # Wl[i, k*H+j] = W[k,i,j]
    T = jnp.tile(jnp.eye(H, dtype=W_bil.dtype), (1, K))        # T[j, k*H+j'] = (j == j')
    Vx = V_w[:, :H].T                                          # (H, K)
    Vy = V_w[:, H:].T                                          # (H, K)
    zeros = jnp.zeros((H, KH), dtype=W_bil.dtype)
    w1 = jnp.concatenate(
        [jnp.concatenate([Wl, zeros, Vx], axis=1),
         jnp.concatenate([zeros, T, Vy], axis=1)], axis=0)     # (2H, 2*KH + K)
    S = jnp.repeat(jnp.eye(K, dtype=W_bil.dtype), H, axis=0)   # (KH, K) selector
    wb = b_bil.reshape(1, K).astype(jnp.float32)
    u = U_w.reshape(1, K).astype(jnp.float32)

    # bf16 operands for the MXU; accumulation stays f32 inside the kernel.
    w1 = w1.astype(jnp.bfloat16)
    S = S.astype(jnp.bfloat16)
    xb = x.astype(jnp.bfloat16)
    yb = y.astype(jnp.bfloat16)

    # ---- batch tiling: grid over rows, weights resident in VMEM ----
    TB = min(block_b, _round_up(B, 16))        # bf16 sublane packing -> mult. of 16
    Bp = _round_up(B, TB)
    if Bp != B:
        pad = ((0, Bp - B), (0, 0))
        xb = jnp.pad(xb, pad)
        yb = jnp.pad(yb, pad)
    grid = (Bp // TB,)

    row_spec = pl.BlockSpec((TB, H), lambda b: (b, 0))
    const2d = lambda b: (0, 0)

    out = pl.pallas_call(
        functools.partial(_matcher_kernel, H=H, K=K),
        out_shape=jax.ShapeDtypeStruct((Bp, 1), jnp.float32),
        grid=grid,
        in_specs=[
            row_spec,                                           # x tile
            row_spec,                                           # y tile
            pl.BlockSpec((2 * H, 2 * KH + K), const2d),         # fused weight 1
            pl.BlockSpec((KH, K), const2d),                     # selector
            pl.BlockSpec((1, K), const2d),                      # bilinear bias
            pl.BlockSpec((1, K), const2d),                      # U row
        ],
        out_specs=pl.BlockSpec((TB, 1), lambda b: (b, 0)),
        compiler_params=pltpu.CompilerParams(
            dimension_semantics=("parallel",)),
    )(xb, yb, w1, S, wb, u)
    return out[:B]


def matcher_reference(x, y, W_bil, b_bil, V_w, U_w):
    bil = jnp.einsum('bi,kij,bj->bk', x, W_bil, y) + b_bil
    lin = jnp.concatenate([x, y], axis=-1) @ V_w.T
    z = bil + lin
    h = 0.5 * z * (1.0 + lax.erf(z / jnp.sqrt(2.0)))
    return h @ U_w.T


if __name__ == "__main__":
    B = 8          # batch of node pairs
    n_hid = 32     # hidden size
    K = n_hid // 2

    key = jax.random.PRNGKey(0)
    kx, ky, kw, kb, kv, ku = jax.random.split(key, 6)

    x = jax.random.normal(kx, (B, n_hid), dtype=jnp.float32)
    y = jax.random.normal(ky, (B, n_hid), dtype=jnp.float32)

    # Deterministic parameter init (PyTorch-style uniform bounds).
    bw = 1.0 / math.sqrt(n_hid)
    W_bil = jax.random.uniform(kw, (K, n_hid, n_hid), minval=-bw, maxval=bw,
                               dtype=jnp.float32)
    b_bil = jax.random.uniform(kb, (K,), minval=-bw, maxval=bw, dtype=jnp.float32)
    bv = 1.0 / math.sqrt(2 * n_hid)
    V_w = jax.random.uniform(kv, (K, 2 * n_hid), minval=-bv, maxval=bv,
                             dtype=jnp.float32)
    bu = 1.0 / math.sqrt(K)
    U_w = jax.random.uniform(ku, (1, K), minval=-bu, maxval=bu, dtype=jnp.float32)

    out = matcher_forward(x, y, W_bil, b_bil, V_w, U_w)
    out = jax.block_until_ready(out)
    assert out.shape == (B, 1)
    assert bool(jnp.all(jnp.isfinite(out)))

    # Reference computed in f32 from the same bf16-rounded operands the kernel
    # sees; tolerance covers the bf16 rounding of the intermediate slab.
    r32 = lambda a: a.astype(jnp.bfloat16).astype(jnp.float32)
    ref = matcher_reference(r32(x), r32(y), r32(W_bil), b_bil, r32(V_w), U_w)
    assert jnp.allclose(out, ref, atol=3e-2, rtol=3e-2), (out, ref)

    print("KERNEL_OK")
</pallas_src>

<mosaic_0001>
module attributes {stable_mosaic.version = 11 : i64} {
  func.func @_matcher_kernel(%arg0: i32, %arg1: memref<16x32xbf16, #tpu.memory_space<vmem>>, %arg2: memref<16x32xbf16, #tpu.memory_space<vmem>>, %arg3: memref<64x1040xbf16, #tpu.memory_space<vmem>>, %arg4: memref<512x16xbf16, #tpu.memory_space<vmem>>, %arg5: memref<1x16xf32, #tpu.memory_space<vmem>>, %arg6: memref<1x16xf32, #tpu.memory_space<vmem>>, %arg7: memref<16x1xf32, #tpu.memory_space<vmem>>) attributes {dimension_semantics = [#tpu.dimension_semantics<parallel>], iteration_bounds = array<i64: 1>, scalar_prefetch = 0 : i64, scratch_operands = 0 : i64, tpu.core_type = #tpu.core_type<tc>, window_params = [{transform_indices = @transform_0, window_bounds = array<i64: 16, 32>}, {transform_indices = @transform_1, window_bounds = array<i64: 16, 32>}, {pipeline_mode = #tpu.pipeline_mode<synchronous>, transform_indices = @transform_2, window_bounds = array<i64: 64, 1040>}, {pipeline_mode = #tpu.pipeline_mode<synchronous>, transform_indices = @transform_3, window_bounds = array<i64: 512, 16>}, {pipeline_mode = #tpu.pipeline_mode<synchronous>, transform_indices = @transform_4, window_bounds = array<i64: 1, 16>}, {pipeline_mode = #tpu.pipeline_mode<synchronous>, transform_indices = @transform_5, window_bounds = array<i64: 1, 16>}, {transform_indices = @transform_6, window_bounds = array<i64: 16, 1>}]} {
    %c0 = arith.constant 0 : index
    %c0_0 = arith.constant 0 : index
    %0 = vector.load %arg1[%c0, %c0_0] : memref<16x32xbf16, #tpu.memory_space<vmem>>, vector<16x32xbf16>
    %c0_1 = arith.constant 0 : index
    %c0_2 = arith.constant 0 : index
    %1 = vector.load %arg2[%c0_1, %c0_2] : memref<16x32xbf16, #tpu.memory_space<vmem>>, vector<16x32xbf16>
    %2 = tpu.concatenate %0, %1 in 1 : vector<16x32xbf16>, vector<16x32xbf16> -> vector<16x64xbf16>
    %c0_3 = arith.constant 0 : index
    %c0_4 = arith.constant 0 : index
    %3 = vector.load %arg3[%c0_3, %c0_4] : memref<64x1040xbf16, #tpu.memory_space<vmem>>, vector<64x1040xbf16>
    %cst = arith.constant dense<0.000000e+00> : vector<16x1040xf32>
    %4 = tpu.matmul %2, %3, %cst {dimension_numbers = #tpu.dot_dimension_numbers<[1], [0], [0], [1], [0, 0, 1, 1], [], []>} : vector<16x64xbf16>, vector<64x1040xbf16>, vector<16x1040xf32> -> vector<16x1040xf32>
    %5 = vector.extract_strided_slice %4 {offsets = [0, 0], sizes = [16, 512], strides = [1, 1]} : vector<16x1040xf32> to vector<16x512xf32>
    %6 = vector.extract_strided_slice %4 {offsets = [0, 512], sizes = [16, 512], strides = [1, 1]} : vector<16x1040xf32> to vector<16x512xf32>
    %7 = vector.extract_strided_slice %4 {offsets = [0, 1024], sizes = [16, 16], strides = [1, 1]} : vector<16x1040xf32> to vector<16x16xf32>
    %8 = arith.mulf %5, %6 : vector<16x512xf32>
    %9 = arith.truncf %8 : vector<16x512xf32> to vector<16x512xbf16>
    %c0_5 = arith.constant 0 : index
    %c0_6 = arith.constant 0 : index
    %10 = vector.load %arg4[%c0_5, %c0_6] : memref<512x16xbf16, #tpu.memory_space<vmem>>, vector<512x16xbf16>
    %cst_7 = arith.constant dense<0.000000e+00> : vector<16x16xf32>
    %11 = tpu.matmul %9, %10, %cst_7 {dimension_numbers = #tpu.dot_dimension_numbers<[1], [0], [0], [1], [0, 0, 1, 1], [], []>} : vector<16x512xbf16>, vector<512x16xbf16>, vector<16x16xf32> -> vector<16x16xf32>
    %12 = arith.addf %11, %7 : vector<16x16xf32>
    %c0_8 = arith.constant 0 : index
    %c0_9 = arith.constant 0 : index
    %13 = vector.load %arg5[%c0_8, %c0_9] : memref<1x16xf32, #tpu.memory_space<vmem>>, vector<1x16xf32>
    %14 = vector.broadcast %13 : vector<1x16xf32> to vector<16x16xf32>
    %15 = arith.addf %12, %14 : vector<16x16xf32>
    %cst_10 = arith.constant 5.000000e-01 : f32
    %16 = vector.broadcast %cst_10 : f32 to vector<16x16xf32>
    %17 = arith.mulf %16, %15 : vector<16x16xf32>
    %cst_11 = arith.constant 0.707106769 : f32
    %18 = vector.broadcast %cst_11 : f32 to vector<16x16xf32>
    %19 = arith.mulf %15, %18 : vector<16x16xf32>
    %20 = math.erf %19 : vector<16x16xf32>
    %cst_12 = arith.constant 1.000000e+00 : f32
    %21 = vector.broadcast %cst_12 : f32 to vector<16x16xf32>
    %22 = arith.addf %21, %20 : vector<16x16xf32>
    %23 = arith.mulf %17, %22 : vector<16x16xf32>
    %c0_13 = arith.constant 0 : index
    %c0_14 = arith.constant 0 : index
    %24 = vector.load %arg6[%c0_13, %c0_14] : memref<1x16xf32, #tpu.memory_space<vmem>>, vector<1x16xf32>
    %25 = vector.broadcast %24 : vector<1x16xf32> to vector<16x16xf32>
    %26 = arith.mulf %23, %25 : vector<16x16xf32>
    %cst_15 = arith.constant dense<0.000000e+00> : vector<16xf32>
    %27 = vector.multi_reduction <add>, %26, %cst_15 [1] : vector<16x16xf32> to vector<16xf32>
    %28 = vector.shape_cast %27 : vector<16xf32> to vector<16x1xf32>
    %c0_16 = arith.constant 0 : index
    %c0_17 = arith.constant 0 : index
    %29 = vector.load %arg7[%c0_16, %c0_17] : memref<16x1xf32, #tpu.memory_space<vmem>>, vector<16x1xf32>
    tpu.vector_store %arg7[%c0_16, %c0_17], %28 {strides = array<i32>} : memref<16x1xf32, #tpu.memory_space<vmem>>, vector<16x1xf32>,
    return
  }
  func.func @transform_0(%arg0: i32) -> (i32, i32) {
    %c0_i32 = arith.constant 0 : i32
    %c0_i32_0 = arith.constant 0 : i32
    return %arg0, %c0_i32 : i32, i32
  }
  func.func @transform_1(%arg0: i32) -> (i32, i32) {
    %c0_i32 = arith.constant 0 : i32
    %c0_i32_0 = arith.constant 0 : i32
    return %arg0, %c0_i32 : i32, i32
  }
  func.func @transform_2(%arg0: i32) -> (i32, i32) {
    %c0_i32 = arith.constant 0 : i32
    %c0_i32_0 = arith.constant 0 : i32
    %c0_i32_1 = arith.constant 0 : i32
    return %c0_i32, %c0_i32_0 : i32, i32
  }
  func.func @transform_3(%arg0: i32) -> (i32, i32) {
    %c0_i32 = arith.constant 0 : i32
    %c0_i32_0 = arith.constant 0 : i32
    %c0_i32_1 = arith.constant 0 : i32
    return %c0_i32, %c0_i32_0 : i32, i32
  }
  func.func @transform_4(%arg0: i32) -> (i32, i32) {
    %c0_i32 = arith.constant 0 : i32
    %c0_i32_0 = arith.constant 0 : i32
    %c0_i32_1 = arith.constant 0 : i32
    return %c0_i32, %c0_i32_0 : i32, i32
  }
  func.func @transform_5(%arg0: i32) -> (i32, i32) {
    %c0_i32 = arith.constant 0 : i32
    %c0_i32_0 = arith.constant 0 : i32
    %c0_i32_1 = arith.constant 0 : i32
    return %c0_i32, %c0_i32_0 : i32, i32
  }
  func.func @transform_6(%arg0: i32) -> (i32, i32) {
    %c0_i32 = arith.constant 0 : i32
    %c0_i32_0 = arith.constant 0 : i32
    return %arg0, %c0_i32 : i32, i32
  }
}

</mosaic_0001>

<bundles_post_ra>
// kernel: tpu_custom_call.1
= control target key start
LH: loop header
LB: loop body
LE: loop exit
PB: predicated region body
PF: predicated region fallthrough
CT: control target
= control target key end

     0   :  { %11 = vsyncpa [#allocation3], 0  ;;  %s1456_s0 = inlined_call_operand.hbm [shape: bf16[16,32], index: 0, kind: input, shape index: {}]   ;;  %s1457_s1 = inlined_call_operand.hbm [shape: bf16[16,32], index: 1, kind: input, shape index: {}]   ;;  %s1458_s2 = inlined_call_operand.vmem [shape: bf16[64,1040], index: 2, kind: input, shape index: {}]   ;;  %s1459_s3 = inlined_call_operand.vmem [shape: bf16[512,16], index: 3, kind: input, shape index: {}]   ;;  %s1460_s4 = inlined_call_operand.vmem [shape: f32[1,16], index: 4, kind: input, shape index: {}]   ;;  %s1461_s5 = inlined_call_operand.vmem [shape: f32[1,16], index: 5, kind: input, shape index: {}]   ;;  %s1462_s6 = inlined_call_operand.vmem [shape: f32[16,1], index: 6, kind: output, shape index: {}]  }
   0x1   :  { %12 = vsyncpa [#allocation5], 0  ;;  %s1186_s21 = smov [#allocation2]  }
   0x2   :  { %s18_s22 = sshll.u32 %s1186_s21, 4  ;;  %s19_s22 = int_to_ptr.vmem [resolvable:$true] %s18_s22 }
   0x3   :  { %s1150_s23 = scalar_lea.vmem %s19_s22, 128  ;;  %p1155_p1 = scmp.lt.s32.totalorder %s19_s22, %s19_s22 }
   0x4   :  { %p1151_p0 = scmp.ne.s32.totalorder %s19_s22, %s1150_s23  ;;  %p1156_p2 = scmp.lt.s32.totalorder %s1150_s23, %s1150_s23 }
   0x6   :  { %p1157_p3 = por %p1156_p2, %p1155_p1 }
   0x8   :  { %p1158_p4 = pnand %p1157_p3, %p1151_p0 }
   0xa   :  { %1161 = shalt.err (!%p1158_p4)
}
   0xb   :  { %s1187_s24 = smov 64   ;;  %s1188_s25 = smov 4  }
   0xc   :  { %24 = dma.hbm_to_vmem [thread:$0]  %s1456_s0, 128, %s19_s22, [#allocation3], %s1187_s24, %s1187_s24, %s1188_s25  }
   0xd   :  { %s1189_s28 = smov [#allocation4]  }
   0xe   :  { %s30_s29 = sshll.u32 %s1189_s28, 4  ;;  %s31_s29 = int_to_ptr.vmem [resolvable:$true] %s30_s29 }
   0xf   :  { %s1170_s30 = scalar_lea.vmem %s31_s29, 128  ;;  %p1175_p6 = scmp.lt.s32.totalorder %s31_s29, %s31_s29 }
  0x10   :  { %p1171_p5 = scmp.ne.s32.totalorder %s31_s29, %s1170_s30  ;;  %p1176_p7 = scmp.lt.s32.totalorder %s1170_s30, %s1170_s30 }
  0x12   :  { %p1177_p8 = por %p1176_p7, %p1175_p6 }
  0x14   :  { %p1178_p9 = pnand %p1177_p8, %p1171_p5 }
  0x16   :  { %1181 = shalt.err (!%p1178_p9)
}
  0x17   :  { %36 = dma.hbm_to_vmem [thread:$0]  %s1457_s1, 128, %s31_s29, [#allocation5], %s1187_s24, %s1187_s24, %s1188_s25  }
  0x18   :  { %1182 = dma.done.wait [#allocation3], 128  }
  0x19   :  { %1183 = vsyncadd [#allocation3], 4294967168 }
  0x1a   :  { %1184 = dma.done.wait [#allocation5], 128  }
  0x1b   :  { %1185 = vsyncadd [#allocation5], 4294967168  ;;  %v1190_v0 = vmov 0   ;;  %v1052_v1 = vld [vmem:[#allocation4] sm:$0xff]   ;;  %v1053_v2 = vld [vmem:[%s1458_s2 + $0xdc] ss:$36 sps:$4 sm:$0xff]  }
  0x1c   :  { %331 = vmatprep.mubr.bf16.mxu0 %v1190_v0  ;;  %374 = vmatprep.mubr.bf16.mxu1 %v1190_v0  ;;  %s1191_s10 = smov 32   ;;  %v1055_v3 = vld [vmem:[%s1458_s2 + $0xe4] ss:$36 sps:$4 sm:$0xff]   ;;  %v1057_v4 = vld [vmem:[%s1458_s2 + $0xd8] ss:$36 sps:$4 sm:$0xff]   ;;  %vm68_vm0 = vcmask 261120  }
  0x1d   :  { %66 = vrot.lane.b32.xlu0 %v1052_v1, %s1191_s10  ;;  %307 = vmatprep.subr.bf16.mxu0 %v1053_v2  ;;  %v1058_v5 = vld [vmem:[%s1458_s2 + $0xe0] ss:$36 sps:$4 sm:$0xff]   ;;  %v1059_v6 = vld [vmem:[%s1458_s2 + $0x94] ss:$36 sps:$4 sm:$0xff]   ;;  %v1065_v10 = vld [vmem:[%s1458_s2 + $0x4c] ss:$36 sps:$4 sm:$0xff]  }
  0x1e   :  { %350 = vmatprep.subr.bf16.mxu1 %v1055_v3  ;;  %308 = vmatpush1.bf16.msra.mxu0 %v1057_v4  ;;  %v1061_v7 = vld [vmem:[%s1458_s2 + $0x9c] ss:$36 sps:$4 sm:$0xff]   ;;  %v1063_v8 = vld [vmem:[%s1458_s2 + $0x90] ss:$36 sps:$4 sm:$0xff]   ;;  %v1069_v12 = vld [vmem:[%s1458_s2 + $0x48] ss:$36 sps:$4 sm:$0xff]  }
  0x1f   :  { %351 = vmatpush1.bf16.msra.mxu1 %v1058_v5  ;;  %309 = vmatprep.subr.bf16.mxu0 %v1059_v6  ;;  %v1064_v9 = vld [vmem:[%s1458_s2 + $0x98] ss:$36 sps:$4 sm:$0xff]   ;;  %v1070_v13 = vld [vmem:[%s1458_s2 + $0x50] ss:$36 sps:$4 sm:$0xff]   ;;  %v1071_v14 = vld [vmem:[%s1458_s2 + $0x4] ss:$36 sps:$4 sm:$0xff]  }
  0x20   :  { %352 = vmatprep.subr.bf16.mxu1 %v1061_v7  ;;  %v1067_v11 = vld [vmem:[%s1458_s2 + $0x54] ss:$36 sps:$4 sm:$0xff]   ;;  %v1073_v15 = vld [vmem:[%s1458_s2 + $0xc] ss:$36 sps:$4 sm:$0xff]   ;;  %v1075_v16 = vld [vmem:[%s1458_s2] ss:$36 sps:$4 sm:$0xff]  }
  0x21   :  { %v1076_v17 = vld [vmem:[%s1458_s2 + $0x8] ss:$36 sps:$4 sm:$0xff]   ;;  %v1083_v19 = vld [vmem:[%s1458_s2 + $0xf4] ss:$36 sps:$4 sm:$0xff]   ;;  %v1077_v20 = vld [vmem:[#allocation2] sm:$0xff]   ;;  %vm296_vm1 = vcmask 523264  }
  0x22   :  { %310 = vmatpush1.bf16.msra.mxu0 %v1063_v8  ;;  %v1080_v18 = vld [vmem:[%s1458_s2 + $0xec] ss:$36 sps:$4 sm:$0xff]   ;;  %v1086_v24 = vld [vmem:[%s1458_s2 + $0xa4] ss:$36 sps:$4 sm:$0xff]   ;;  %v1092_v29 = vld [vmem:[%s1458_s2 + $0x5c] ss:$36 sps:$4 sm:$0xff]  }
  0x23   :  { %353 = vmatpush1.bf16.msra.mxu1 %v1064_v9  ;;  %311 = vmatprep.subr.bf16.mxu0 %v1065_v10  ;;  %v1078_v21 = vld [vmem:[%s1458_s2 + $0xe8] ss:$36 sps:$4 sm:$0xff]   ;;  %v1081_v22 = vld [vmem:[%s1458_s2 + $0xf0] ss:$36 sps:$4 sm:$0xff]   ;;  %v1084_v27 = vld [vmem:[%s1458_s2 + $0xa0] ss:$36 sps:$4 sm:$0xff]  }
  0x24   :  { %354 = vmatprep.subr.bf16.mxu1 %v1067_v11  ;;  %v1089_v25 = vld [vmem:[%s1458_s2 + $0xac] ss:$36 sps:$4 sm:$0xff]   ;;  %v1095_v30 = vld [vmem:[%s1458_s2 + $0x64] ss:$36 sps:$4 sm:$0xff]   ;;  %v1090_v31 = vld [vmem:[%s1458_s2 + $0x58] ss:$36 sps:$4 sm:$0xff]  }
  0x25   :  { %v1087_v28 = vld [vmem:[%s1458_s2 + $0xa8] ss:$36 sps:$4 sm:$0xff]   ;;  %v1093_v32 = vld [vmem:[%s1458_s2 + $0x60] ss:$36 sps:$4 sm:$0xff]   ;;  %v1098_v33 = vld [vmem:[%s1458_s2 + $0x14] ss:$36 sps:$4 sm:$0xff]  }
  0x26   :  { %312 = vmatpush1.bf16.msra.mxu0 %v1069_v12  ;;  %v1101_v34 = vld [vmem:[%s1458_s2 + $0x1c] ss:$36 sps:$4 sm:$0xff]   ;;  %v1096_v35 = vld [vmem:[%s1458_s2 + $0x10] ss:$36 sps:$4 sm:$0xff]   ;;  %v1192_v39 = vmov 0.0   ;;  %vm1193_vm2 = vmmov 0  }
  0x27   :  { %355 = vmatpush1.bf16.msra.mxu1 %v1070_v13  ;;  %313 = vmatprep.subr.bf16.mxu0 %v1071_v14  ;;  %v1099_v36 = vld [vmem:[%s1458_s2 + $0x18] ss:$36 sps:$4 sm:$0xff]   ;;  %v1110_v41 = vld [vmem:[%s1459_s3 + $0x70] sm:$0xff]   ;;  %v1104_v43 = vld [vmem:[%s1458_s2 + $0x68] ss:$36 sps:$4 sm:$0xff]   ;;  %vm890_vm3 = vcmask 130048  }
  0x28   :  { %356 = vmatprep.subr.bf16.mxu1 %v1073_v15  ;;  %v1106_v37 = vld [vmem:[%s1459_s3 + $0x78] sm:$0xff]   ;;  %v1103_v42 = vld [vmem:[%s1458_s2 + $0xb0] ss:$36 sps:$4 sm:$0xff]   ;;  %v1105_v44 = vld [vmem:[%s1458_s2 + $0x20] ss:$36 sps:$4 sm:$0xff]   ;;  %vm897_vm4 = vcmask 7168  }
  0x29   :  { %v1102_v38 = vld [vmem:[%s1458_s2 + $0xf8] ss:$36 sps:$4 sm:$0xff]   ;;  %v1111_v47 = vld [vmem:[%s1459_s3 + $0xf0] sm:$0xff]   ;;  %v1114_v50 = vld [vmem:[%s1459_s3 + $0x68] sm:$0xff]  }
  0x2a   :  { %314 = vmatpush1.bf16.msra.mxu0 %v1075_v16  ;;  %v1108_v40 = vld [vmem:[%s1459_s3 + $0x38] sm:$0xff]   ;;  %v1112_v48 = vld [vmem:[%s1459_s3 + $0x30] sm:$0xff]   ;;  %v1115_v51 = vld [vmem:[%s1459_s3 + $0xe8] sm:$0xff]  }
  0x2b   :  { %357 = vmatpush1.bf16.msra.mxu1 %v1076_v17  ;;  %393 = vmatprep.subr.bf16.mxu0 %v1080_v18  ;;  %v1107_v45 = vld [vmem:[%s1459_s3 + $0xf8] sm:$0xff]   ;;  %v1113_v49 = vld [vmem:[%s1459_s3 + $0xb0] sm:$0xff]   ;;  %v1116_v52 = vld [vmem:[%s1459_s3 + $0x28] sm:$0xff]  }
  0x2c   :  { %436 = vmatprep.subr.bf16.mxu1 %v1083_v19  ;;  %v1109_v46 = vld [vmem:[%s1459_s3 + $0xb8] sm:$0xff]   ;;  %v1117_v53 = vld [vmem:[%s1459_s3 + $0xa8] sm:$0xff]   ;;  %v1118_v54 = vld [vmem:[%s1459_s3 + $0x60] sm:$0xff]  }
  0x2d   :  { %v1119_v55 = vld [vmem:[%s1459_s3 + $0xe0] sm:$0xff]   ;;  %v1122_v58 = vld [vmem:[%s1459_s3 + $0x58] sm:$0xff]   ;;  %v1126_v62 = vld [vmem:[%s1459_s3 + $0x50] sm:$0xff]  }
  0x2e   :  { %v1120_v56 = vld [vmem:[%s1459_s3 + $0x20] sm:$0xff]   ;;  %v1123_v59 = vld [vmem:[%s1459_s3 + $0xd8] sm:$0xff]   ;;  %v1127_v63 = vld [vmem:[%s1459_s3 + $0xd0] sm:$0xff]  }
  0x2f   :  { %v1121_v57 = vld [vmem:[%s1459_s3 + $0xa0] sm:$0xff]   ;;  %v1124_v60 = vld [vmem:[%s1459_s3 + $0x18] sm:$0xff]   ;;  %v1129_v1 = vld [vmem:[%s1459_s3 + $0x90] sm:$0xff]  }
  0x30   :  { %v1125_v61 = vld [vmem:[%s1459_s3 + $0x98] sm:$0xff]   ;;  %v1130_v2 = vld [vmem:[%s1459_s3 + $0x48] sm:$0xff]   ;;  %v1134_v6 = vld [vmem:[%s1459_s3 + $0x40] sm:$0xff]  }
  0x31   :  { %v1131_v3 = vld [vmem:[%s1459_s3 + $0xc8] sm:$0xff]   ;;  %v1135_v7 = vld [vmem:[%s1459_s3 + $0xc0] sm:$0xff]  }
  0x32   :  { %v1132_v4 = vld [vmem:[%s1459_s3 + $0x8] sm:$0xff]   ;;  %v1136_v8 = vld [vmem:[%s1459_s3] sm:$0xff]  }
  0x33   :  { %v1133_v5 = vld [vmem:[%s1459_s3 + $0x88] sm:$0xff]   ;;  %v1137_v9 = vld [vmem:[%s1459_s3 + $0x80] sm:$0xff]  }
  0x8f   :  { %v67_v23 = vpop.permute.xlu0 %66 }
  0x90   :  { %v71_v26 = vsel %vm68_vm0, %v1077_v20, %v67_v23 }
  0x91   :  { %944 = vmatmul.mubr.msk.bf16.vlgmr.msra.gmra.mxu0 %vm296_vm1, %v71_v26  ;;  %945 = vmatmul.mubr.msk.bf16.vlgmr.msra.gmra.mxu1 %vm296_vm1, %v71_v26 }
  0x92   :  { %394 = vmatpush1.bf16.msra.mxu0 %v1078_v21  ;;  %437 = vmatpush1.bf16.msra.mxu1 %v1081_v22 }
  0x93   :  { %395 = vmatprep.subr.bf16.mxu0 %v1086_v24  ;;  %438 = vmatprep.subr.bf16.mxu1 %v1089_v25 }
  0x94   :  { %417 = vmatprep.mubr.bf16.mxu0 %v1190_v0  ;;  %460 = vmatprep.mubr.bf16.mxu1 %v1190_v0  ;;  %v1128_v0 = vld [vmem:[%s1459_s3 + $0x10] sm:$0xff]  }
  0x96   :  { %396 = vmatpush1.bf16.msra.mxu0 %v1084_v27  ;;  %439 = vmatpush1.bf16.msra.mxu1 %v1087_v28 }
  0x97   :  { %397 = vmatprep.subr.bf16.mxu0 %v1092_v29  ;;  %440 = vmatprep.subr.bf16.mxu1 %v1095_v30 }
  0x9a   :  { %398 = vmatpush1.bf16.msra.mxu0 %v1090_v31  ;;  %441 = vmatpush1.bf16.msra.mxu1 %v1093_v32 }
  0x9b   :  { %399 = vmatprep.subr.bf16.mxu0 %v1098_v33  ;;  %442 = vmatprep.subr.bf16.mxu1 %v1101_v34 }
  0x9e   :  { %400 = vmatpush1.bf16.msra.mxu0 %v1096_v35  ;;  %443 = vmatpush1.bf16.msra.mxu1 %v1099_v36 }
  0x9f   :  { %1032 = vmatprep.subr.bf16.mxu0 %v1192_v39  ;;  %988 = vmatprep.subr.bf16.mxu1 %v1106_v37 }
  0xa1   :  { %946 = vmatmul.mubr.msk.bf16.vlgmr.msra.gmra.mxu0 %vm296_vm1, %v71_v26  ;;  %947 = vmatmul.mubr.msk.bf16.vlgmr.msra.gmra.mxu1 %vm296_vm1, %v71_v26 }
  0xa2   :  { %1033 = vmatpush3.bf16.msra.mxu0 %v1102_v38  ;;  %1040 = vmatprep.mubr.msk.bf16.mxu0 %vm1193_vm2, %v1192_v39 }
  0xa3   :  { %1034 = vmatprep.subr.bf16.mxu0 %v1192_v39  ;;  %989 = vmatpush3.bf16.msra.mxu1 %v1108_v40 }
  0xa4   :  { %990 = vmatprep.subr.bf16.mxu1 %v1110_v41 }
  0xa6   :  { %1035 = vmatpush3.bf16.msra.mxu0 %v1103_v42 }
  0xa7   :  { %1036 = vmatprep.subr.bf16.mxu0 %v1192_v39  ;;  %991 = vmatpush3.bf16.msra.mxu1 %v1112_v48 }
  0xa8   :  { %992 = vmatprep.subr.bf16.mxu1 %v1114_v50 }
  0xaa   :  { %1037 = vmatpush3.bf16.msra.mxu0 %v1104_v43 }
  0xab   :  { %1038 = vmatprep.subr.bf16.mxu0 %v1192_v39  ;;  %993 = vmatpush3.bf16.msra.mxu1 %v1116_v52 }
  0xac   :  { %994 = vmatprep.subr.bf16.mxu1 %v1118_v54 }
  0xae   :  { %1039 = vmatpush3.bf16.msra.mxu0 %v1105_v44 }
  0xaf   :  { %1010 = vmatprep.subr.bf16.mxu0 %v1107_v45  ;;  %995 = vmatpush3.bf16.msra.mxu1 %v1120_v56 }
  0xb0   :  { %996 = vmatprep.subr.bf16.mxu1 %v1122_v58 }
  0xb1   :  { %1041 = vmatmul.mubr.msk.bf16.vlgmr.msra.gmra.mxu0 %vm296_vm1, %v71_v26 }
  0xb2   :  { %1011 = vmatpush3.bf16.msra.mxu0 %v1109_v46 }
  0xb3   :  { %1012 = vmatprep.subr.bf16.mxu0 %v1111_v47  ;;  %997 = vmatpush3.bf16.msra.mxu1 %v1124_v60 }
  0xb4   :  { %998 = vmatprep.subr.bf16.mxu1 %v1126_v62 }
  0xb6   :  { %1013 = vmatpush3.bf16.msra.mxu0 %v1113_v49 }
  0xb7   :  { %1014 = vmatprep.subr.bf16.mxu0 %v1115_v51  ;;  %999 = vmatpush3.bf16.msra.mxu1 %v1128_v0  ;;  %v981_v51 = vld [vmem:[%s1460_s4] ss:$0 sm:$0xff] }
  0xb8   :  { %1000 = vmatprep.subr.bf16.mxu1 %v1130_v2  ;;  %v982_v2 = vld [vmem:[%s1461_s5] ss:$0 sm:$0xff] }
  0xba   :  { %1015 = vmatpush3.bf16.msra.mxu0 %v1117_v53 }
  0xbb   :  { %1016 = vmatprep.subr.bf16.mxu0 %v1119_v55  ;;  %1001 = vmatpush3.bf16.msra.mxu1 %v1132_v4 }
  0xbc   :  { %1002 = vmatprep.subr.bf16.mxu1 %v1134_v6 }
  0xbe   :  { %1017 = vmatpush3.bf16.msra.mxu0 %v1121_v57 }
  0xbf   :  { %1018 = vmatprep.subr.bf16.mxu0 %v1123_v59  ;;  %1003 = vmatpush3.bf16.msra.mxu1 %v1136_v8 }
  0xc2   :  { %1019 = vmatpush3.bf16.msra.mxu0 %v1125_v61 }
  0xc3   :  { %1020 = vmatprep.subr.bf16.mxu0 %v1127_v63 }
  0xc6   :  { %1021 = vmatpush3.bf16.msra.mxu0 %v1129_v1 }
  0xc7   :  { %1022 = vmatprep.subr.bf16.mxu0 %v1131_v3 }
  0xca   :  { %1023 = vmatpush3.bf16.msra.mxu0 %v1133_v5 }
  0xcb   :  { %1024 = vmatprep.subr.bf16.mxu0 %v1135_v7 }
  0xce   :  { %1025 = vmatpush3.bf16.msra.mxu0 %v1137_v9 }
 0x151   :  { %v333_v10 = vpop.f32.mrf.mxu0  ;;  %v376_v11 = vpop.f32.mrf.mxu1 }
 0x153   :  { %v335_v12 = vpop.f32.mrf.mxu0  ;;  %v378_v13 = vpop.f32.mrf.mxu1 }
 0x155   :  { %v337_v14 = vpop.f32.mrf.mxu0  ;;  %v380_v15 = vpop.f32.mrf.mxu1 }
 0x157   :  { %v339_v16 = vpop.f32.mrf.mxu0  ;;  %v382_v17 = vpop.f32.mrf.mxu1 }
 0x161   :  { %v419_v18 = vpop.f32.mrf.mxu0  ;;  %v462_v19 = vpop.f32.mrf.mxu1 }
 0x162   :  { %v512_v32 = vmul.f32 %v419_v18, %v333_v10  ;;  %v514_v33 = vmul.f32 %v462_v19, %v376_v11 }
 0x163   :  { %v421_v20 = vpop.f32.mrf.mxu0  ;;  %v464_v21 = vpop.f32.mrf.mxu1 }
 0x164   :  { %v513_v28 = vmul.f32 %v421_v20, %v335_v12  ;;  %v515_v29 = vmul.f32 %v464_v21, %v378_v13 }
 0x165   :  { %v423_v22 = vpop.f32.mrf.mxu0  ;;  %v466_v23 = vpop.f32.mrf.mxu1 }
 0x166   :  { %v516_v24 = vmul.f32 %v423_v22, %v337_v14  ;;  %v518_v25 = vmul.f32 %v466_v23, %v380_v15 }
 0x167   :  { %v425_v26 = vpop.f32.mrf.mxu0  ;;  %v468_v27 = vpop.f32.mrf.mxu1 }
 0x168   :  { %v517_v30 = vmul.f32 %v425_v26, %v339_v16  ;;  %v519_v31 = vmul.f32 %v468_v27, %v382_v17  ;;  %v520_v36 = vpack.c.bf16 %v516_v24, %v512_v32  ;;  %v522_v37 = vpack.c.bf16 %v518_v25, %v514_v33 }
 0x16a   :  { %v521_v34 = vpack.c.bf16 %v517_v30, %v513_v28  ;;  %v523_v35 = vpack.c.bf16 %v519_v31, %v515_v29 }
 0x16c   :  { %812 = vmatprep.mubr.bf16.mxu1 %v521_v34  ;;  %853 = vmatprep.mubr.bf16.mxu0 %v523_v35 }
 0x16d   :  { %813 = vmatmul.mubr.bf16.vlgmr.msra.gmra.mxu1 %v520_v36  ;;  %854 = vmatmul.mubr.bf16.vlgmr.msra.gmra.mxu0 %v522_v37 }
 0x171   :  { %v505_v38 = vpop.f32.mrf.mxu0 }
 0x173   :  { %v1042_v39 = vpop.f32.mrf.mxu0 }
 0x175   :  { %v508_v40 = vpop.f32.mrf.mxu0 }
 0x177   :  { %v1043_v41 = vpop.f32.mrf.mxu0 }
 0x22d   :  { %v1004_v42 = vpop.f32.mrf.mxu1  ;;  %v1026_v43 = vpop.f32.mrf.mxu0 }
 0x22f   :  { %v1005_v44 = vpop.f32.mrf.mxu1  ;;  %v1027_v45 = vpop.f32.mrf.mxu0 }
 0x230   :  { %v1006_v46 = vadd.f32 %v1005_v44, %v1004_v42  ;;  %v1028_v50 = vadd.f32 %v1027_v45, %v1026_v43 }
 0x231   :  { %v1007_v47 = vpop.f32.mrf.mxu1  ;;  %v1029_v48 = vpop.f32.mrf.mxu0 }
 0x232   :  { %v815_v49 = vadd.f32 %v1006_v46, %v505_v38 }
 0x233   :  { %v1008_v52 = vpop.f32.mrf.mxu1  ;;  %v1030_v53 = vpop.f32.mrf.mxu0 }
 0x234   :  { %v856_v54 = vadd.f32 %v1028_v50, %v815_v49  ;;  %v1009_v55 = vadd.f32 %v1008_v52, %v1007_v47  ;;  %v1031_v58 = vadd.f32 %v1030_v53, %v1029_v48 }
 0x236   :  { %v869_v56 = vadd.f32 %v981_v51, %v856_v54  ;;  %v818_v57 = vadd.f32 %v1009_v55, %v508_v40 }
 0x238   :  { %v873_v59 = vmul.f32 0.70710677, %v869_v56  ;;  %v859_v60 = vadd.f32 %v1031_v58, %v818_v57  ;;  %v871_v0 = vmul.f32 0.5, %v869_v56 }
 0x23a   :  { %1138 = verf.f32 %v873_v59  ;;  %v870_v61 = vadd.f32 %v981_v51, %v859_v60 }
 0x23c   :  { %v874_v62 = vmul.f32 0.70710677, %v870_v61  ;;  %v872_v6 = vmul.f32 0.5, %v870_v61 }
 0x23e   :  { %1140 = verf.f32 %v874_v62 }
 0x247   :  { %v1139_v63 = vpop.eup %1138 }
 0x248   :  { %v877_v1 = vadd.f32 1.0, %v1139_v63 }
 0x24a   :  { %v879_v3 = vmul.f32 %v877_v1, %v871_v0 }
 0x24b   :  { %v1141_v4 = vpop.eup %1140 }
 0x24c   :  { %v888_v5 = vmul.f32 %v982_v2, %v879_v3  ;;  %v878_v7 = vadd.f32 1.0, %v1141_v4 }
 0x24e   :  { %v891_v8 = vsel %vm890_vm3, %v888_v5, 0.0  ;;  %v880_v9 = vmul.f32 %v878_v7, %v872_v6 }
 0x24f   :  { %892 = vadd.xlane.f32.xlu0 %v891_v8 }
 0x250   :  { %v889_v10 = vmul.f32 %v982_v2, %v880_v9 }
 0x252   :  { %v894_v11 = vsel %vm890_vm3, %v889_v10, 0.0 }
 0x253   :  { %895 = vadd.xlane.f32.xlu1 %v894_v11 }
 0x2d8   :  { %v893_v12 = vpop.xlane.xlu0 %892 }
 0x2d9   :  { %898 = vst.msk [vmem:[%s1462_s6] sm:$0xff] %vm897_vm4, %v893_v12 }
 0x2dc   :  { %v896_v13 = vpop.xlane.xlu1 %895 }
 0x2dd   :  { %899 = vst.msk [vmem:[%s1462_s6 + $0x8] sm:$0xff] %vm897_vm4, %v896_v13 }
 0x2de   :  { %904 = vsyncpa [#allocation3], 1 }
 0x2df   :  { %905 = vsyncpa [#allocation5], 1 }

</bundles_post_ra>
